<compile_context>
chip_gen: v7x
topology: tpu7x:2x2x1
jax: 0.10.0
libtpu: 0.0.40
codegen_flags: <defaults>
</compile_context>

<pallas_src>
import jax
import jax.numpy as jnp
from jax.experimental import pallas as pl
from jax.experimental.pallas import tpu as pltpu

# GENERATORCONFIGS['mnist'] = (hidden_dim, latent_dim, input_channel, n_class, noise_dim, gan_channels)
HIDDEN_DIM = 256
LATENT_DIM = 84
N_CLASS = 10
NOISE_DIM = 32
INPUT_DIM = NOISE_DIM + N_CLASS     # embedding=False -> 42
K_PAD = 128                         # lane-dense padded contraction dim of fc1
N_PAD = 128                         # lane-dense padded output dim of fc2
BN_EPS = 1e-5


def generator_kernel(u_ref, labels_ref, w1_ref, b1_ref, gamma_ref, beta_ref,
                     w2_ref, b2_ref, out_ref):
    """Fused [one-hot + concat] -> Linear -> BatchNorm1d(train) -> ReLU -> Linear."""
    B = out_ref.shape[0]

    # ---- glue: z = [eps | one_hot | zeros] as a lane-dense (B, 128) slab ----
    # u_ref holds U[0,1) in every lane; only lanes [0, NOISE_DIM) are eps.
    col = jax.lax.broadcasted_iota(jnp.int32, (B, K_PAD), 1)
    labels = labels_ref[...]                                        # (B, 1) int32
    one_hot = jnp.where(col == labels + NOISE_DIM, 1.0, 0.0)        # lanes [32, 42)
    z = jnp.where(col < NOISE_DIM, u_ref[...], one_hot)             # (B, 128) padded z

    # ---- fc layer (MXU, f32; K padded to 128 with zero weights) ----
    h = jnp.dot(z, w1_ref[...], preferred_element_type=jnp.float32) + b1_ref[...]

    # ---- BatchNorm1d in training mode: biased batch statistics over batch dim ----
    inv_b = jnp.float32(1.0 / B)
    mu = jnp.sum(h, axis=0, keepdims=True) * inv_b                  # (1, HIDDEN_DIM)
    centered = h - mu
    var = jnp.sum(centered * centered, axis=0, keepdims=True) * inv_b
    h = centered * jax.lax.rsqrt(var + BN_EPS) * gamma_ref[...] + beta_ref[...]

    # ---- ReLU ----
    h = jnp.maximum(h, 0.0)

    # ---- representation layer (MXU, f32), lane-dense (B, 128) output ----
    out_ref[...] = (jnp.dot(h, w2_ref[...], preferred_element_type=jnp.float32)
                    + b2_ref[...])


def generator_forward(labels, prepared, key):
    """Wrapper reproducing Generator.forward(labels). Returns dict with 'eps', 'output'.

    `prepared` must come from prepare_params() (weights already lane-padded)."""
    batch_size = labels.shape[0]

    # U[0,1) slab; lanes [0, NOISE_DIM) are eps (matches torch.rand semantics).
    u = jax.random.uniform(key, (batch_size, K_PAD), dtype=jnp.float32)
    labels2d = labels.reshape(batch_size, 1).astype(jnp.int32)

    full = lambda shape: pl.BlockSpec(shape, lambda: (0,) * len(shape),
                                      memory_space=pltpu.MemorySpace.VMEM)

    out_pad = pl.pallas_call(
        generator_kernel,
        out_shape=jax.ShapeDtypeStruct((batch_size, N_PAD), jnp.float32),
        in_specs=[
            full((batch_size, K_PAD)),                  # uniform slab (holds eps)
            full((batch_size, 1)),                      # labels (B, 1) int32
            full(prepared["w1"].shape), full(prepared["b1"].shape),
            full(prepared["gamma"].shape), full(prepared["beta"].shape),
            full(prepared["w2"].shape), full(prepared["b2"].shape),
        ],
        out_specs=full((batch_size, N_PAD)),
    )(u, labels2d, prepared["w1"], prepared["b1"], prepared["gamma"],
      prepared["beta"], prepared["w2"], prepared["b2"])

    return {"eps": u[:, :NOISE_DIM], "output": out_pad[:, :LATENT_DIM]}


def init_params(key):
    """Deterministic parameter init (canonical, unpadded PyTorch shapes)."""
    k1, k2, k3, k4 = jax.random.split(key, 4)
    scale1 = 1.0 / jnp.sqrt(INPUT_DIM)
    scale2 = 1.0 / jnp.sqrt(HIDDEN_DIM)
    return {
        # nn.Linear(42, 256): weight (256, 42) stored transposed as (42, 256)
        "w1": jax.random.uniform(k1, (INPUT_DIM, HIDDEN_DIM), jnp.float32, -scale1, scale1),
        "b1": jax.random.uniform(k2, (1, HIDDEN_DIM), jnp.float32, -scale1, scale1),
        # nn.BatchNorm1d(256): gamma=1, beta=0
        "gamma": jnp.ones((1, HIDDEN_DIM), jnp.float32),
        "beta": jnp.zeros((1, HIDDEN_DIM), jnp.float32),
        # nn.Linear(256, 84): weight (84, 256) stored transposed as (256, 84)
        "w2": jax.random.uniform(k3, (HIDDEN_DIM, LATENT_DIM), jnp.float32, -scale2, scale2),
        "b2": jax.random.uniform(k4, (1, LATENT_DIM), jnp.float32, -scale2, scale2),
    }


def prepare_params(params):
    """One-time lane-dense zero-padding of the weights (hoisted out of the forward)."""
    w1_pad = jnp.zeros((K_PAD, HIDDEN_DIM), jnp.float32).at[:INPUT_DIM, :].set(params["w1"])
    w2_pad = jnp.zeros((HIDDEN_DIM, N_PAD), jnp.float32).at[:, :LATENT_DIM].set(params["w2"])
    b2_pad = jnp.zeros((1, N_PAD), jnp.float32).at[:, :LATENT_DIM].set(params["b2"])
    return {"w1": w1_pad, "b1": params["b1"], "gamma": params["gamma"],
            "beta": params["beta"], "w2": w2_pad, "b2": b2_pad}


def reference_forward(eps, labels, params):
    """Pure-JAX reference (consumes the wrapper-produced eps; math is f32)."""
    y = jax.nn.one_hot(labels, N_CLASS, dtype=jnp.float32)
    z = jnp.concatenate([eps, y], axis=1)
    h = z @ params["w1"] + params["b1"]
    mu = h.mean(axis=0, keepdims=True)
    var = ((h - mu) ** 2).mean(axis=0, keepdims=True)
    h = (h - mu) / jnp.sqrt(var + BN_EPS) * params["gamma"] + params["beta"]
    h = jnp.maximum(h, 0.0)
    return h @ params["w2"] + params["b2"]


if __name__ == "__main__":
    key = jax.random.PRNGKey(0)
    k_param, k_label, k_eps = jax.random.split(key, 3)

    batch = 8
    labels = jax.random.randint(k_label, (batch,), 0, N_CLASS, dtype=jnp.int32)
    params = init_params(k_param)
    prepared = prepare_params(params)      # one-time padding, not in the per-call path

    fwd = jax.jit(generator_forward)
    result = fwd(labels, prepared, k_eps)
    out = jax.block_until_ready(result["output"])
    eps = jax.block_until_ready(result["eps"])

    # Shape / range sanity.
    assert out.shape == (batch, LATENT_DIM)
    assert eps.shape == (batch, NOISE_DIM)
    assert bool(jnp.all(jnp.isfinite(eps))) and float(eps.min()) >= 0.0 and float(eps.max()) < 1.0

    # Correctness: feed the same eps through an f32 pure-JAX reference.
    ref = reference_forward(eps, labels, params)
    assert jnp.allclose(out, ref, atol=2e-4, rtol=2e-4), "mismatch vs reference"

    # TODO(synk): BatchNorm1d running_mean/running_var updates, DiversityLoss,
    # NLL/MSE losses and normalize_images are module-state / loss-time utilities,
    # not part of forward(); omitted from the kernel.
    print("KERNEL_OK")
</pallas_src>

<mosaic_0001>
module attributes {stable_mosaic.version = 11 : i64} {
  func.func @generator_kernel(%arg0: memref<8x128xf32, #tpu.memory_space<vmem>>, %arg1: memref<8x1xi32, #tpu.memory_space<vmem>>, %arg2: memref<128x256xf32, #tpu.memory_space<vmem>>, %arg3: memref<1x256xf32, #tpu.memory_space<vmem>>, %arg4: memref<1x256xf32, #tpu.memory_space<vmem>>, %arg5: memref<1x256xf32, #tpu.memory_space<vmem>>, %arg6: memref<256x128xf32, #tpu.memory_space<vmem>>, %arg7: memref<1x128xf32, #tpu.memory_space<vmem>>, %arg8: memref<8x128xf32, #tpu.memory_space<vmem>>) attributes {dimension_semantics = [], scalar_prefetch = 0 : i64, scratch_operands = 0 : i64, tpu.core_type = #tpu.core_type<tc>} {
    %0 = tpu.iota {dimensions = array<i32: 1>} : vector<8x128xi32>
    %c0 = arith.constant 0 : index
    %c0_0 = arith.constant 0 : index
    %1 = vector.load %arg1[%c0, %c0_0] : memref<8x1xi32, #tpu.memory_space<vmem>>, vector<8x1xi32>
    %c32_i32 = arith.constant 32 : i32
    %2 = vector.broadcast %c32_i32 : i32 to vector<8x1xi32>
    %3 = arith.addi %1, %2 : vector<8x1xi32>
    %4 = vector.broadcast %3 : vector<8x1xi32> to vector<8x128xi32>
    %5 = arith.cmpi eq, %0, %4 : vector<8x128xi32>
    %cst = arith.constant 1.000000e+00 : f32
    %cst_1 = arith.constant 0.000000e+00 : f32
    %6 = vector.broadcast %cst : f32 to vector<8x128xf32>
    %7 = vector.broadcast %cst_1 : f32 to vector<8x128xf32>
    %8 = arith.select %5, %6, %7 : vector<8x128xi1>, vector<8x128xf32>
    %c32_i32_2 = arith.constant 32 : i32
    %9 = vector.broadcast %c32_i32_2 : i32 to vector<8x128xi32>
    %10 = arith.cmpi slt, %0, %9 : vector<8x128xi32>
    %c0_3 = arith.constant 0 : index
    %c0_4 = arith.constant 0 : index
    %11 = vector.load %arg0[%c0_3, %c0_4] : memref<8x128xf32, #tpu.memory_space<vmem>>, vector<8x128xf32>
    %12 = arith.select %10, %11, %8 : vector<8x128xi1>, vector<8x128xf32>
    %c0_5 = arith.constant 0 : index
    %c0_6 = arith.constant 0 : index
    %13 = vector.load %arg2[%c0_5, %c0_6] : memref<128x256xf32, #tpu.memory_space<vmem>>, vector<128x256xf32>
    %cst_7 = arith.constant dense<0.000000e+00> : vector<8x256xf32>
    %14 = tpu.matmul %12, %13, %cst_7 {dimension_numbers = #tpu.dot_dimension_numbers<[1], [0], [0], [1], [0, 0, 1, 1], [], []>} : vector<8x128xf32>, vector<128x256xf32>, vector<8x256xf32> -> vector<8x256xf32>
    %c0_8 = arith.constant 0 : index
    %c0_9 = arith.constant 0 : index
    %15 = vector.load %arg3[%c0_8, %c0_9] : memref<1x256xf32, #tpu.memory_space<vmem>>, vector<1x256xf32>
    %16 = vector.broadcast %15 : vector<1x256xf32> to vector<8x256xf32>
    %17 = arith.addf %14, %16 : vector<8x256xf32>
    %cst_10 = arith.constant dense<0.000000e+00> : vector<256xf32>
    %18 = vector.multi_reduction <add>, %17, %cst_10 [0] : vector<8x256xf32> to vector<256xf32>
    %19 = vector.shape_cast %18 : vector<256xf32> to vector<1x256xf32>
    %cst_11 = arith.constant 1.250000e-01 : f32
    %20 = vector.broadcast %cst_11 : f32 to vector<1x256xf32>
    %21 = arith.mulf %19, %20 : vector<1x256xf32>
    %22 = vector.broadcast %21 : vector<1x256xf32> to vector<8x256xf32>
    %23 = arith.subf %17, %22 : vector<8x256xf32>
    %24 = arith.mulf %23, %23 : vector<8x256xf32>
    %cst_12 = arith.constant dense<0.000000e+00> : vector<256xf32>
    %25 = vector.multi_reduction <add>, %24, %cst_12 [0] : vector<8x256xf32> to vector<256xf32>
    %26 = vector.shape_cast %25 : vector<256xf32> to vector<1x256xf32>
    %cst_13 = arith.constant 1.250000e-01 : f32
    %27 = vector.broadcast %cst_13 : f32 to vector<1x256xf32>
    %28 = arith.mulf %26, %27 : vector<1x256xf32>
    %cst_14 = arith.constant 9.99999974E-6 : f32
    %29 = vector.broadcast %cst_14 : f32 to vector<1x256xf32>
    %30 = arith.addf %28, %29 : vector<1x256xf32>
    %31 = math.rsqrt %30 : vector<1x256xf32>
    %32 = vector.broadcast %31 : vector<1x256xf32> to vector<8x256xf32>
    %33 = arith.mulf %23, %32 : vector<8x256xf32>
    %c0_15 = arith.constant 0 : index
    %c0_16 = arith.constant 0 : index
    %34 = vector.load %arg4[%c0_15, %c0_16] : memref<1x256xf32, #tpu.memory_space<vmem>>, vector<1x256xf32>
    %35 = vector.broadcast %34 : vector<1x256xf32> to vector<8x256xf32>
    %36 = arith.mulf %33, %35 : vector<8x256xf32>
    %c0_17 = arith.constant 0 : index
    %c0_18 = arith.constant 0 : index
    %37 = vector.load %arg5[%c0_17, %c0_18] : memref<1x256xf32, #tpu.memory_space<vmem>>, vector<1x256xf32>
    %38 = vector.broadcast %37 : vector<1x256xf32> to vector<8x256xf32>
    %39 = arith.addf %36, %38 : vector<8x256xf32>
    %cst_19 = arith.constant 0.000000e+00 : f32
    %40 = vector.broadcast %cst_19 : f32 to vector<8x256xf32>
    %41 = arith.maximumf %39, %40 : vector<8x256xf32>
    %c0_20 = arith.constant 0 : index
    %c0_21 = arith.constant 0 : index
    %42 = vector.load %arg6[%c0_20, %c0_21] : memref<256x128xf32, #tpu.memory_space<vmem>>, vector<256x128xf32>
    %cst_22 = arith.constant dense<0.000000e+00> : vector<8x128xf32>
    %43 = tpu.matmul %41, %42, %cst_22 {dimension_numbers = #tpu.dot_dimension_numbers<[1], [0], [0], [1], [0, 0, 1, 1], [], []>} : vector<8x256xf32>, vector<256x128xf32>, vector<8x128xf32> -> vector<8x128xf32>
    %c0_23 = arith.constant 0 : index
    %c0_24 = arith.constant 0 : index
    %44 = vector.load %arg7[%c0_23, %c0_24] : memref<1x128xf32, #tpu.memory_space<vmem>>, vector<1x128xf32>
    %45 = vector.broadcast %44 : vector<1x128xf32> to vector<8x128xf32>
    %46 = arith.addf %43, %45 : vector<8x128xf32>
    %c0_25 = arith.constant 0 : index
    %c0_26 = arith.constant 0 : index
    %47 = vector.load %arg8[%c0_25, %c0_26] : memref<8x128xf32, #tpu.memory_space<vmem>>, vector<8x128xf32>
    tpu.vector_store %arg8[%c0_25, %c0_26], %46 {strides = array<i32>} : memref<8x128xf32, #tpu.memory_space<vmem>>, vector<8x128xf32>,
    return
  }
}

</mosaic_0001>

<bundles_post_ra>
// kernel: generator_forward.1
= control target key start
LH: loop header
LB: loop body
LE: loop exit
PB: predicated region body
PF: predicated region fallthrough
CT: control target
= control target key end

     0   :  { %13 = vsyncpa [#allocation3], 0  ;;  %s675_s0 = inlined_call_operand.vmem [shape: f32[8,128], index: 0, kind: input, shape index: {}]   ;;  %s676_s1 = inlined_call_operand.vmem [shape: s32[8,1], index: 1, kind: input, shape index: {}]   ;;  %s677_s2 = inlined_call_operand.hbm [shape: f32[128,256], index: 2, kind: input, shape index: {}]   ;;  %s678_s3 = inlined_call_operand.vmem [shape: f32[1,256], index: 3, kind: input, shape index: {}]   ;;  %s679_s4 = inlined_call_operand.vmem [shape: f32[1,256], index: 4, kind: input, shape index: {}]   ;;  %s680_s5 = inlined_call_operand.vmem [shape: f32[1,256], index: 5, kind: input, shape index: {}]   ;;  %s681_s6 = inlined_call_operand.hbm [shape: f32[256,128], index: 6, kind: input, shape index: {}]   ;;  %s682_s7 = inlined_call_operand.vmem [shape: f32[1,128], index: 7, kind: input, shape index: {}]   ;;  %s683_s8 = inlined_call_operand.hbm [shape: f32[8,128], index: 8, kind: output, shape index: {}]  }
   0x1   :  { %14 = vsyncpa [#allocation6], 0 }
   0x2   :  { %15 = vsyncpa [#allocation4], 0  ;;  %s565_s27 = smov [#allocation2]   ;;  %s493_s9 = scalar_lea.hbm %s677_s2, 4096 }
   0x3   :  { %s25_s28 = sshll.u32 %s565_s27, 4  ;;  %p494_p0 = scmp.ne.s32.totalorder %s677_s2, %s493_s9  ;;  %s26_s28 = int_to_ptr.vmem [resolvable:$true] %s25_s28 }
   0x4   :  { %p497_p1 = scmp.lt.u32.totalorder %s493_s9, %s677_s2 }
   0x6   :  { %p499_p2 = pnand %p497_p1, %p494_p0 }
   0x8   :  { %502 = shalt.err (!%p499_p2)
}
   0x9   :  { %s503_s14 = scalar_lea.vmem %s26_s28, 4096  ;;  %p508_p4 = scmp.lt.s32.totalorder %s26_s28, %s26_s28 }
   0xa   :  { %p504_p3 = scmp.ne.s32.totalorder %s26_s28, %s503_s14  ;;  %p509_p5 = scmp.lt.s32.totalorder %s503_s14, %s503_s14 }
   0xc   :  { %p510_p6 = por %p509_p5, %p508_p4 }
   0xe   :  { %p511_p7 = pnand %p510_p6, %p504_p3 }
  0x10   :  { %514 = shalt.err (!%p511_p7)
}
  0x11   :  { %s566_s15 = smov 256   ;;  %s567_s16 = smov 16  }
  0x12   :  { %31 = dma.hbm_to_vmem [thread:$0]  %s677_s2, 4096, %s26_s28, [#allocation3], %s566_s15, %s566_s15, %s567_s16  }
  0x13   :  { %s568_s19 = smov [#allocation5]   ;;  %s515_s23 = scalar_lea.hbm %s681_s6, 4096 }
  0x14   :  { %s43_s20 = sshll.u32 %s568_s19, 4  ;;  %p516_p8 = scmp.ne.s32.totalorder %s681_s6, %s515_s23  ;;  %s44_s20 = int_to_ptr.vmem [resolvable:$true] %s43_s20 }
  0x15   :  { %p519_p9 = scmp.lt.u32.totalorder %s515_s23, %s681_s6 }
  0x17   :  { %p521_p10 = pnand %p519_p9, %p516_p8 }
  0x19   :  { %524 = shalt.err (!%p521_p10)
}
  0x1a   :  { %s525_s29 = scalar_lea.vmem %s44_s20, 4096  ;;  %p530_p12 = scmp.lt.s32.totalorder %s44_s20, %s44_s20 }
  0x1b   :  { %p526_p11 = scmp.ne.s32.totalorder %s44_s20, %s525_s29  ;;  %p531_p13 = scmp.lt.s32.totalorder %s525_s29, %s525_s29 }
  0x1d   :  { %p532_p0 = por %p531_p13, %p530_p12 }
  0x1f   :  { %p533_p1 = pnand %p532_p0, %p526_p11 }
  0x21   :  { %536 = shalt.err (!%p533_p1)
}
  0x22   :  { %s569_s2 = smov 128   ;;  %s570_s28 = smov 8  }
  0x23   :  { %49 = dma.hbm_to_vmem [thread:$0]  %s681_s6, 4096, %s44_s20, [#allocation6], %s569_s2, %s569_s2, %s570_s28  }
  0x24   :  { %559 = dma.done.wait [#allocation3], 4096  }
  0x25   :  { %560 = vsyncadd [#allocation3], 4294963200 }
  0x26   :  { %561 = dma.done.wait [#allocation6], 4096  }
  0x27   :  { %562 = vsyncadd [#allocation6], 4294963200  ;;  %v571_v0 = vmov 0   ;;  %v60_v1 = vld [vmem:[%s676_s1] sm:$0xff]  ;;  %v71_v2 = vld [vmem:[#allocation2 + $0x8] sm:$0xff]  ;;  %v572_v17 = vmov 0.0   ;;  %v58_v52 = vlaneseq }
  0x28   :  { %488 = vset.pattern.permute.xlu0 %v571_v0  ;;  %v73_v3 = vld [vmem:[#allocation2 + $0x18] sm:$0xff]  ;;  %v61_v4 = vadd.s32 32, %v60_v1  ;;  %v70_v6 = vld [vmem:[#allocation2] sm:$0xff]  ;;  %v72_v7 = vld [vmem:[#allocation2 + $0x10] sm:$0xff]  ;;  %178 = vmatprep.mubr.f32.mxu0 %v572_v17 }
  0x29   :  { %v415_v5 = vpack.c.bf16 %v73_v3, %v71_v2  ;;  %v75_v8 = vld [vmem:[#allocation2 + $0x28] sm:$0xff]  ;;  %v417_v9 = vpack.c.bf16 %v72_v7, %v70_v6  ;;  %v77_v10 = vld [vmem:[#allocation2 + $0x38] sm:$0xff]  ;;  %v74_v11 = vld [vmem:[#allocation2 + $0x20] sm:$0xff]  ;;  %v59_v53 = vand.u32 127, %v58_v52 }
  0x2a   :  { %v76_v12 = vld [vmem:[#allocation2 + $0x30] sm:$0xff]  ;;  %63 = vperm.xlu0 %488, %v61_v4   ;;  %v419_v13 = vpack.c.bf16 %v77_v10, %v75_v8  ;;  %v79_v14 = vld [vmem:[#allocation2 + $0x48] sm:$0xff]  ;;  %v81_v15 = vld [vmem:[#allocation2 + $0x58] sm:$0xff] }
  0x2b   :  { %416 = vmatprep.subr.bf16.mxu0 %v415_v5  ;;  %v421_v16 = vpack.c.bf16 %v76_v12, %v74_v11  ;;  %v423_v18 = vpack.c.bf16 %v81_v15, %v79_v14  ;;  %v78_v19 = vld [vmem:[#allocation2 + $0x40] sm:$0xff]  ;;  %v80_v20 = vld [vmem:[#allocation2 + $0x50] sm:$0xff]  ;;  %v83_v21 = vld [vmem:[#allocation2 + $0x68] sm:$0xff]  ;;  %vm67_vm0 = vcmp.lt.s32.totalorder %v59_v53, 32 }
  0x2c   :  { %418 = vmatpush1.bf16.msra.mxu0 %v417_v9  ;;  %v85_v22 = vld [vmem:[#allocation2 + $0x78] sm:$0xff]  ;;  %v425_v23 = vpack.c.bf16 %v80_v20, %v78_v19  ;;  %v82_v25 = vld [vmem:[#allocation2 + $0x60] sm:$0xff]  ;;  %v84_v26 = vld [vmem:[#allocation2 + $0x70] sm:$0xff] }
  0x2d   :  { %420 = vmatprep.subr.bf16.mxu0 %v419_v13  ;;  %v427_v24 = vpack.c.bf16 %v85_v22, %v83_v21  ;;  %v87_v27 = vld [vmem:[#allocation2 + $0x88] sm:$0xff]  ;;  %v89_v28 = vld [vmem:[#allocation2 + $0x98] sm:$0xff]  ;;  %v429_v29 = vpack.c.bf16 %v84_v26, %v82_v25  ;;  %v86_v31 = vld [vmem:[#allocation2 + $0x80] sm:$0xff] }
  0x2e   :  { %v431_v30 = vpack.c.bf16 %v89_v28, %v87_v27  ;;  %v88_v32 = vld [vmem:[#allocation2 + $0x90] sm:$0xff]  ;;  %v91_v33 = vld [vmem:[#allocation2 + $0xa8] sm:$0xff]  ;;  %v93_v34 = vld [vmem:[#allocation2 + $0xb8] sm:$0xff] }
  0x2f   :  { %v433_v35 = vpack.c.bf16 %v88_v32, %v86_v31  ;;  %v435_v36 = vpack.c.bf16 %v93_v34, %v91_v33  ;;  %v90_v37 = vld [vmem:[#allocation2 + $0xa0] sm:$0xff]  ;;  %v92_v38 = vld [vmem:[#allocation2 + $0xb0] sm:$0xff]  ;;  %v95_v39 = vld [vmem:[#allocation2 + $0xc8] sm:$0xff] }
  0x30   :  { %422 = vmatpush1.bf16.msra.mxu0 %v421_v16  ;;  %v97_v40 = vld [vmem:[#allocation2 + $0xd8] sm:$0xff]  ;;  %v437_v41 = vpack.c.bf16 %v92_v38, %v90_v37  ;;  %v94_v43 = vld [vmem:[#allocation2 + $0xc0] sm:$0xff]  ;;  %v96_v44 = vld [vmem:[#allocation2 + $0xd0] sm:$0xff] }
  0x31   :  { %424 = vmatprep.subr.bf16.mxu0 %v423_v18  ;;  %v439_v42 = vpack.c.bf16 %v97_v40, %v95_v39  ;;  %v99_v45 = vld [vmem:[#allocation2 + $0xe8] sm:$0xff]  ;;  %v101_v46 = vld [vmem:[#allocation2 + $0xf8] sm:$0xff]  ;;  %v441_v47 = vpack.c.bf16 %v96_v44, %v94_v43  ;;  %v98_v49 = vld [vmem:[#allocation2 + $0xe0] sm:$0xff] }
  0x32   :  { %v443_v48 = vpack.c.bf16 %v101_v46, %v99_v45  ;;  %v100_v50 = vld [vmem:[#allocation2 + $0xf0] sm:$0xff]  ;;  %v68_v55 = vld [vmem:[%s675_s0] sm:$0xff]  ;;  %v270_v59 = vld [vmem:[#allocation5 + $0x88] sm:$0xff] }
  0x33   :  { %v445_v51 = vpack.c.bf16 %v100_v50, %v98_v49  ;;  %v269_v58 = vld [vmem:[#allocation5 + $0x80] sm:$0xff]  ;;  %v254_v62 = vld [vmem:[#allocation5 + $0x8] sm:$0xff]  ;;  %v271_v0 = vld [vmem:[#allocation5 + $0x90] sm:$0xff] }
  0x34   :  { %426 = vmatpush1.bf16.msra.mxu0 %v425_v23  ;;  %v447_v60 = vpack.c.bf16 %v270_v59, %v269_v58  ;;  %v253_v61 = vld [vmem:[#allocation5] sm:$0xff]  ;;  %v272_v1 = vld [vmem:[#allocation5 + $0x98] sm:$0xff]  ;;  %v255_v3 = vld [vmem:[#allocation5 + $0x10] sm:$0xff] }
  0x35   :  { %428 = vmatprep.subr.bf16.mxu0 %v427_v24  ;;  %v449_v63 = vpack.c.bf16 %v254_v62, %v253_v61  ;;  %v451_v2 = vpack.c.bf16 %v272_v1, %v271_v0  ;;  %v256_v4 = vld [vmem:[#allocation5 + $0x18] sm:$0xff]  ;;  %v273_v6 = vld [vmem:[#allocation5 + $0xa0] sm:$0xff]  ;;  %v274_v7 = vld [vmem:[#allocation5 + $0xa8] sm:$0xff] }
  0x36   :  { %448 = vmatprep.subr.bf16.mxu1 %v447_v60  ;;  %v453_v5 = vpack.c.bf16 %v256_v4, %v255_v3  ;;  %v455_v8 = vpack.c.bf16 %v274_v7, %v273_v6  ;;  %v257_v9 = vld [vmem:[#allocation5 + $0x20] sm:$0xff]  ;;  %v258_v10 = vld [vmem:[#allocation5 + $0x28] sm:$0xff]  ;;  %v275_v12 = vld [vmem:[#allocation5 + $0xb0] sm:$0xff] }
  0x37   :  { %450 = vmatpush3.bf16.msra.mxu1 %v449_v63  ;;  %v457_v11 = vpack.c.bf16 %v258_v10, %v257_v9  ;;  %v276_v13 = vld [vmem:[#allocation5 + $0xb8] sm:$0xff]  ;;  %v259_v15 = vld [vmem:[#allocation5 + $0x30] sm:$0xff]  ;;  %v277_v18 = vld [vmem:[#allocation5 + $0xc0] sm:$0xff] }
  0x38   :  { %430 = vmatpush1.bf16.msra.mxu0 %v429_v29  ;;  %452 = vmatprep.subr.bf16.mxu1 %v451_v2  ;;  %v459_v14 = vpack.c.bf16 %v276_v13, %v275_v12  ;;  %v260_v16 = vld [vmem:[#allocation5 + $0x38] sm:$0xff]  ;;  %v278_v19 = vld [vmem:[#allocation5 + $0xc8] sm:$0xff]  ;;  %v261_v21 = vld [vmem:[#allocation5 + $0x40] sm:$0xff] }
  0x39   :  { %432 = vmatprep.subr.bf16.mxu0 %v431_v30  ;;  %v463_v20 = vpack.c.bf16 %v278_v19, %v277_v18  ;;  %v262_v22 = vld [vmem:[#allocation5 + $0x48] sm:$0xff]  ;;  %v279_v24 = vld [vmem:[#allocation5 + $0xd0] sm:$0xff]  ;;  %v280_v25 = vld [vmem:[#allocation5 + $0xd8] sm:$0xff] }
  0x3a   :  { %v465_v23 = vpack.c.bf16 %v262_v22, %v261_v21  ;;  %v467_v26 = vpack.c.bf16 %v280_v25, %v279_v24  ;;  %v263_v27 = vld [vmem:[#allocation5 + $0x50] sm:$0xff]  ;;  %v264_v28 = vld [vmem:[#allocation5 + $0x58] sm:$0xff]  ;;  %v281_v30 = vld [vmem:[#allocation5 + $0xe0] sm:$0xff] }
  0x3b   :  { %454 = vmatpush3.bf16.msra.mxu1 %v453_v5  ;;  %v469_v29 = vpack.c.bf16 %v264_v28, %v263_v27  ;;  %v282_v31 = vld [vmem:[#allocation5 + $0xe8] sm:$0xff]  ;;  %v265_v33 = vld [vmem:[#allocation5 + $0x60] sm:$0xff]  ;;  %v284_v37 = vld [vmem:[#allocation5 + $0xf8] sm:$0xff] }
  0x3c   :  { %434 = vmatpush1.bf16.msra.mxu0 %v433_v35  ;;  %456 = vmatprep.subr.bf16.mxu1 %v455_v8  ;;  %v471_v32 = vpack.c.bf16 %v282_v31, %v281_v30  ;;  %v266_v34 = vld [vmem:[#allocation5 + $0x68] sm:$0xff]  ;;  %v283_v35 = vld [vmem:[#allocation5 + $0xf0] sm:$0xff]  ;;  %v268_v39 = vld [vmem:[#allocation5 + $0x78] sm:$0xff] }
  0x3d   :  { %436 = vmatprep.subr.bf16.mxu0 %v435_v36  ;;  %v473_v36 = vpack.c.bf16 %v266_v34, %v265_v33  ;;  %v267_v38 = vld [vmem:[#allocation5 + $0x70] sm:$0xff]  ;;  %v475_v40 = vpack.c.bf16 %v284_v37, %v283_v35  ;;  %v102_v44 = vld [vmem:[%s678_s3] sm:$0x3] }
  0x3e   :  { %v223_v22 = vld [vmem:[%s679_s4] sm:$0x3] }
  0x3f   :  { %458 = vmatpush3.bf16.msra.mxu1 %v457_v11 }
  0x40   :  { %438 = vmatpush1.bf16.msra.mxu0 %v437_v41  ;;  %460 = vmatprep.subr.bf16.mxu1 %v459_v14  ;;  %v477_v41 = vpack.c.bf16 %v268_v39, %v267_v38  ;;  %v379_v39 = vld [vmem:[%s682_s7] ss:$0 sm:$0xff] }
  0x41   :  { %440 = vmatprep.subr.bf16.mxu0 %v439_v42  ;;  %v105_v42 = vshrl.u32 %v58_v52, 7 }
  0x43   :  { %v106_v43 = vsub.s32 0, %v105_v42  ;;  %v110_v45 = vsub.s32 1, %v105_v42 }
  0x44   :  { %442 = vmatpush1.bf16.msra.mxu0 %v441_v47 }
  0x45   :  { %444 = vmatprep.subr.bf16.mxu0 %v443_v48  ;;  %v107_v46 = vrot.slane %v102_v44, %v106_v43  ;;  %v111_v47 = vrot.slane %v102_v44, %v110_v45  ;;  %v228_v24 = vrot.slane %v223_v22, %v106_v43 }
  0x48   :  { %446 = vmatpush1.bf16.msra.mxu0 %v445_v51 }
  0xa9   :  { %v64_v54 = vpop.permute.xlu0 %63 }
  0xaa   :  { %vm65_vm1 = vcmp.eq.s32.totalorder %v59_v53, %v64_v54 }
  0xab   :  { %v66_v56 = vsel %vm65_vm1, 1.0, %v572_v17  ;;  %v461_v17 = vpack.c.bf16 %v260_v16, %v259_v15 }
  0xac   :  { %v69_v57 = vsel %vm67_vm0, %v68_v55, %v66_v56 }
  0xad   :  { %179 = vmatmul.mubr.f32.vlgmr.msra.gmra.mrb[0].mxu0 %v69_v57  ;;  %462 = vmatpush3.bf16.msra.mxu1 %v461_v17 }
  0xae   :  { %464 = vmatprep.subr.bf16.mxu1 %v463_v20 }
  0xb1   :  { %466 = vmatpush3.bf16.msra.mxu1 %v465_v23  ;;  %v237_v23 = vld [vmem:[%s680_s5] sm:$0x3]  ;;  %s573_s5 = smov [#allocation7]  }
  0xb2   :  { %468 = vmatprep.subr.bf16.mxu1 %v467_v26  ;;  %v232_v26 = vrot.slane %v223_v22, %v110_v45  ;;  %v246_v31 = vrot.slane %v237_v23, %v110_v45  ;;  %s369_s17 = sshll.u32 %s573_s5, 4  ;;  %s370_s17 = int_to_ptr.vmem [resolvable:$true] %s369_s17 }
  0xb3   :  { %s537_s18 = scalar_lea.vmem %s370_s17, 128  ;;  %p542_p3 = scmp.lt.s32.totalorder %s370_s17, %s370_s17 }
  0xb4   :  { %p538_p2 = scmp.ne.s32.totalorder %s370_s17, %s537_s18  ;;  %p543_p4 = scmp.lt.s32.totalorder %s537_s18, %s537_s18 }
  0xb5   :  { %470 = vmatpush3.bf16.msra.mxu1 %v469_v29  ;;  %v242_v29 = vrot.slane %v237_v23, %v106_v43 }
  0xb6   :  { %472 = vmatprep.subr.bf16.mxu1 %v471_v32  ;;  %p544_p5 = por %p543_p4, %p542_p3 }
  0xb8   :  { %p545_p6 = pnand %p544_p5, %p538_p2 }
  0xb9   :  { %474 = vmatpush3.bf16.msra.mxu1 %v473_v36 }
  0xba   :  { %476 = vmatprep.subr.bf16.mxu1 %v475_v40 }
  0xbd   :  { %478 = vmatpush3.bf16.msra.mxu1 %v477_v41 }
 0x180   :  { %v180_v48 = vpop.f32.mrb[0].mxu0 }
 0x181   :  { %v181_v49 = vadd.f32 %v180_v48, %v107_v46  ;;  %v182_v50 = vpop.f32.mrb[1].mxu0 }
 0x182   :  { %v183_v51 = vadd.f32 %v182_v50, %v111_v47 }
 0x183   :  { %v185_v53 = vrot.slane %v181_v49, 4 }
 0x184   :  { %v191_v54 = vrot.slane %v183_v51, 4 }
 0x185   :  { %v186_v55 = vadd.f32 %v185_v53, %v181_v49 }
 0x186   :  { %v192_v56 = vadd.f32 %v191_v54, %v183_v51 }
 0x187   :  { %v187_v57 = vrot.slane %v186_v55, 2 }
 0x188   :  { %v193_v58 = vrot.slane %v192_v56, 2 }
 0x189   :  { %v188_v59 = vadd.f32 %v187_v57, %v186_v55 }
 0x18a   :  { %v194_v52 = vadd.f32 %v193_v58, %v192_v56 }
 0x18b   :  { %v189_v60 = vrot.slane %v188_v59, 1 }
 0x18c   :  { %v195_v61 = vrot.slane %v194_v52, 1 }
 0x18d   :  { %v190_v62 = vadd.f32 %v189_v60, %v188_v59 }
 0x18e   :  { %v196_v63 = vadd.f32 %v195_v61, %v194_v52 }
 0x18f   :  { %v197_v0 = vmul.f32 0.125, %v190_v62 }
 0x190   :  { %v198_v1 = vmul.f32 0.125, %v196_v63 }
 0x191   :  { %v199_v2 = vsub.f32 %v181_v49, %v197_v0 }
 0x192   :  { %v200_v3 = vsub.f32 %v183_v51, %v198_v1 }
 0x193   :  { %v201_v4 = vmul.f32 %v199_v2, %v199_v2 }
 0x194   :  { %v202_v5 = vmul.f32 %v200_v3, %v200_v3 }
 0x195   :  { %v203_v6 = vrot.slane %v201_v4, 4 }
 0x196   :  { %v209_v7 = vrot.slane %v202_v5, 4 }
 0x197   :  { %v204_v8 = vadd.f32 %v203_v6, %v201_v4 }
 0x198   :  { %v210_v9 = vadd.f32 %v209_v7, %v202_v5 }
 0x199   :  { %v205_v10 = vrot.slane %v204_v8, 2 }
 0x19a   :  { %v211_v11 = vrot.slane %v210_v9, 2 }
 0x19b   :  { %v206_v12 = vadd.f32 %v205_v10, %v204_v8 }
 0x19c   :  { %v212_v13 = vadd.f32 %v211_v11, %v210_v9 }
 0x19d   :  { %v207_v14 = vrot.slane %v206_v12, 1 }
 0x19e   :  { %v213_v15 = vrot.slane %v212_v13, 1 }
 0x19f   :  { %v208_v16 = vadd.f32 %v207_v14, %v206_v12 }
 0x1a0   :  { %v214_v17 = vadd.f32 %v213_v15, %v212_v13 }
 0x1a1   :  { %v215_v18 = vmul.f32 0.125, %v208_v16 }
 0x1a2   :  { %v216_v19 = vmul.f32 0.125, %v214_v17 }
 0x1a3   :  { %v217_v20 = vadd.f32 1e-05, %v215_v18 }
 0x1a4   :  { %v218_v21 = vadd.f32 1e-05, %v216_v19 }
 0x1a5   :  { %489 = vrsqrt.f32 %v217_v20 }
 0x1a6   :  { %491 = vrsqrt.f32 %v218_v21 }
 0x1af   :  { %v490_v25 = vpop.eup %489 }
 0x1b0   :  { %v492_v27 = vpop.eup %491  ;;  %v221_v28 = vmul.f32 %v490_v25, %v199_v2 }
 0x1b1   :  { %v222_v30 = vmul.f32 %v492_v27, %v200_v3 }
 0x1b2   :  { %v235_v32 = vmul.f32 %v228_v24, %v221_v28 }
 0x1b3   :  { %v236_v33 = vmul.f32 %v232_v26, %v222_v30 }
 0x1b4   :  { %v249_v34 = vadd.f32 %v242_v29, %v235_v32 }
 0x1b5   :  { %v250_v35 = vadd.f32 %v246_v31, %v236_v33 }
 0x1b6   :  { %v251_v37 = vmax.f32 %v249_v34, 0.0 }
 0x1b7   :  { %v252_v36 = vmax.f32 %v250_v35, 0.0 }
 0x1b9   :  { %356 = vmatprep.mubr.f32.mxu1 %v252_v36 }
 0x1ba   :  { %357 = vmatmul.mubr.f32.vlgmr.msra.gmra.mrb[0].mxu1 %v251_v37 }
 0x28d   :  { %v412_v38 = vpop.f32.mrb[0].mxu1 }
 0x28e   :  { %v413_v40 = vpop.f32.mrb[1].mxu1 }
 0x28f   :  { %v414_v41 = vadd.f32 %v413_v40, %v412_v38 }
 0x291   :  { %v359_v42 = vadd.f32 %v414_v41, %v379_v39 }
 0x293   :  { %362 = vst [vmem:[#allocation7] sm:$0xff] %v359_v42 }
 0x294   :  { %548 = shalt.err (!%p545_p6)
}
 0x295   :  { %s549_s21 = scalar_lea.hbm %s683_s8, 128 }
 0x296   :  { %p550_p7 = scmp.ne.s32.totalorder %s683_s8, %s549_s21  ;;  %p553_p8 = scmp.lt.u32.totalorder %s549_s21, %s683_s8 }
 0x298   :  { %p555_p9 = pnand %p553_p8, %p550_p7 }
 0x29a   :  { %558 = shalt.err (!%p555_p9)
}
 0x29b   :  { %372 = dma.vmem_to_hbm [thread:$0]  %s370_s17, 128, %s683_s8, [#allocation4]  }
 0x29c   :  { %563 = dma.done.wait [#allocation4], 128  }
 0x29d   :  { %564 = vsyncadd [#allocation4], 4294967168 }
 0x29e   :  { %376 = vsyncpa [#allocation3], 1 }
 0x29f   :  { %377 = vsyncpa [#allocation6], 1 }
 0x2a0   :  { %378 = vsyncpa [#allocation4], 1 }

</bundles_post_ra>
